<compile_context>
chip_gen: v5e
topology: v5e:2x2
jax: 0.10.0
libtpu: 0.0.40
codegen_flags: <defaults>
</compile_context>

<pallas_src>
import jax
import jax.numpy as jnp
from jax.experimental import pallas as pl
from jax.experimental.pallas import tpu as pltpu  # noqa: F401  (TPU backend)


def _full_spec(shape):
    # Whole-array block (grid is empty -> index_map takes no args).
    return pl.BlockSpec(shape, lambda: (0,) * len(shape))


def fused_kernel(x_ref, weff_ref, b_ref, o_ref):
    # x_ref:    (3, HW)        raw input, channels x flattened pixels
    # weff_ref: (3, 2, 3, HW)  deep-folded weight  [co, n, cj, hw]
    # b_ref:    (3, 2)         every bias in the chain folded into one constant
    # o_ref:    (3, 2)         final output (channels x linear-out, i.e. post transpose(1,0))
    x = x_ref[...]                                        # (3, HW)
    w = weff_ref[...]                                     # (3, 2, 3, HW)
    prod = w * x[None, None, :, :]                        # VPU broadcast multiply
    part = jnp.sum(prod, axis=-1)                         # lane reduce     -> (3, 2, 3)
    o_ref[...] = jnp.sum(part, axis=-1) + b_ref[...]      # sublane reduce  -> (3, 2)


def prepare_params(conv_w, conv_b, convt_w, convt_b, lin_w, lin_b, H, W):
    """One-time folding of the whole affine chain into (Weff, btot). Runs offline,
    NOT on the per-call forward path."""
    HW = H * W
    wc = conv_w[:, :, 0, 0]                                          # (o1, cj)
    # ConvTranspose2d weight is (Cin=o1, Cout=co, kH, kW) -> (k, co, o1), k = kh*2+kw
    wt = jnp.transpose(convt_w, (2, 3, 1, 0)).reshape(4, 3, 3)
    wfold = jnp.einsum("koi,ij->koj", wt, wc)                        # (4, co, cj)
    bfold = jnp.einsum("koi,i->ko", wt, conv_b) + convt_b[None, :]   # (4, co)

    # Permute Linear columns from m = (2h+kh)*2W + 2w+kw to (k, hw) ordering.
    wl = lin_w.reshape(2, H, 2, W, 2)                                # (n, h, kh, w, kw)
    wl = jnp.transpose(wl, (0, 2, 4, 1, 3))                          # (n, kh, kw, h, w)
    wl3 = wl.reshape(2, 4, HW)                                       # (n, k, hw)

    # Deep fold: Weff[co, n, cj, hw] = sum_k wfold[k, co, cj] * wl3[n, k, hw]
    weff = jnp.einsum("koj,nkh->onjh", wfold, wl3)                   # (3, 2, 3, HW)

    # Fold ALL biases: btot[co, n] = sum_k bfold[k, co] * sum_hw wl3[n, k, hw] + lin_b[n]
    s = wl3.sum(axis=2)                                              # (n, k)
    btot = jnp.einsum("ko,nk->on", bfold, s) + lin_b[None, :]        # (3, 2)
    return weff.astype(jnp.float32), btot.astype(jnp.float32)


@jax.jit
def model_forward(x, weff, btot):
    N, Cin, H, W = x.shape
    assert N == 1 and Cin == 3
    HW = H * W
    x2 = x[0].reshape(Cin, HW)                                       # contiguous view

    flops = 2 * weff.size                                            # 6 * 3 * HW MACs
    bytes_accessed = 4 * (x2.size + weff.size + btot.size + 6)
    return pl.pallas_call(
        fused_kernel,
        out_shape=jax.ShapeDtypeStruct((3, 2), jnp.float32),
        in_specs=[
            _full_spec((Cin, HW)),
            _full_spec((3, 2, 3, HW)),
            _full_spec((3, 2)),
        ],
        out_specs=_full_spec((3, 2)),
        cost_estimate=pl.CostEstimate(
            flops=flops, transcendentals=0, bytes_accessed=bytes_accessed),
    )(x2, weff, btot)


if __name__ == "__main__":
    key = jax.random.PRNGKey(0)
    ks = jax.random.split(key, 7)

    # Small shapes consistent with the module: Linear(3072, 2) forces 4*N*H*W == 3072.
    N, Cin, H, W = 1, 3, 16, 48
    x1 = jax.random.normal(ks[0], (N, Cin, H, W), jnp.float32)

    # Deterministic parameter init (shapes follow the PyTorch module).
    conv_w = jax.random.normal(ks[1], (3, 3, 1, 1), jnp.float32) * 0.3   # Conv2d (out,in,1,1)
    conv_b = jax.random.normal(ks[2], (3,), jnp.float32) * 0.1
    convt_w = jax.random.normal(ks[3], (3, 3, 2, 2), jnp.float32) * 0.3  # ConvTranspose2d (in,out,kH,kW)
    convt_b = jax.random.normal(ks[4], (3,), jnp.float32) * 0.1
    lin_w = jax.random.normal(ks[5], (2, 3072), jnp.float32) * 0.02      # Linear (out,in)
    lin_b = jax.random.normal(ks[6], (2,), jnp.float32) * 0.1

    # One-time parameter folding (hoisted out of the per-call forward path).
    weff, btot = prepare_params(conv_w, conv_b, convt_w, convt_b, lin_w, lin_b, H, W)
    weff, btot = jax.block_until_ready((weff, btot))

    out = model_forward(x1, weff, btot)
    out = jax.block_until_ready(out)
    assert out.shape == (3, 2) and out.dtype == jnp.float32

    # Pure-JAX reference (unfolded path) for correctness.
    wc = conv_w[:, :, 0, 0]
    v1_ref = jnp.einsum("oi,ihw->ohw", wc, x1[0]) + conv_b[:, None, None]
    t = jnp.einsum("ihw,iokl->ohkwl", v1_ref, convt_w)
    v2_ref = t.reshape(3, 2 * H, 2 * W) + convt_b[:, None, None]
    flat_ref = v2_ref.reshape(3, -1)
    ref = flat_ref @ lin_w.T + lin_b[None, :]
    assert jnp.allclose(out, ref, atol=1e-3, rtol=1e-3), (out, ref)

    print("KERNEL_OK")
</pallas_src>

<mosaic_0001>
module attributes {stable_mosaic.version = 11 : i64} {
  func.func @fused_kernel(%arg0: memref<3x768xf32, #tpu.memory_space<vmem>>, %arg1: memref<3x2x3x768xf32, #tpu.memory_space<vmem>>, %arg2: memref<3x2xf32, #tpu.memory_space<vmem>>, %arg3: memref<3x2xf32, #tpu.memory_space<vmem>>) attributes {dimension_semantics = [], scalar_prefetch = 0 : i64, scratch_operands = 0 : i64, tpu.core_type = #tpu.core_type<tc>} {
    %c0 = arith.constant 0 : index
    %c0_0 = arith.constant 0 : index
    %0 = vector.load %arg0[%c0, %c0_0] : memref<3x768xf32, #tpu.memory_space<vmem>>, vector<3x768xf32>
    %c0_1 = arith.constant 0 : index
    %c0_2 = arith.constant 0 : index
    %c0_3 = arith.constant 0 : index
    %c0_4 = arith.constant 0 : index
    %1 = vector.load %arg1[%c0_1, %c0_2, %c0_3, %c0_4] : memref<3x2x3x768xf32, #tpu.memory_space<vmem>>, vector<3x2x3x768xf32>
    %2 = vector.shape_cast %0 : vector<3x768xf32> to vector<1x1x3x768xf32>
    %3 = vector.broadcast %2 : vector<1x1x3x768xf32> to vector<3x2x3x768xf32>
    %4 = arith.mulf %1, %3 : vector<3x2x3x768xf32>
    %cst = arith.constant dense<0.000000e+00> : vector<3x2x3xf32>
    %5 = vector.multi_reduction <add>, %4, %cst [3] : vector<3x2x3x768xf32> to vector<3x2x3xf32>
    %cst_5 = arith.constant dense<0.000000e+00> : vector<3x2xf32>
    %6 = vector.multi_reduction <add>, %5, %cst_5 [2] : vector<3x2x3xf32> to vector<3x2xf32>
    %c0_6 = arith.constant 0 : index
    %c0_7 = arith.constant 0 : index
    %7 = vector.load %arg2[%c0_6, %c0_7] : memref<3x2xf32, #tpu.memory_space<vmem>>, vector<3x2xf32>
    %8 = arith.addf %6, %7 : vector<3x2xf32>
    %c0_8 = arith.constant 0 : index
    %c0_9 = arith.constant 0 : index
    %9 = vector.load %arg3[%c0_8, %c0_9] : memref<3x2xf32, #tpu.memory_space<vmem>>, vector<3x2xf32>
    tpu.vector_store %arg3[%c0_8, %c0_9], %8 {strides = array<i32>} : memref<3x2xf32, #tpu.memory_space<vmem>>, vector<3x2xf32>,
    return
  }
}

</mosaic_0001>

<bundles_post_ra>
// kernel: squeeze.1
= control target key start
LH: loop header
LB: loop body
LE: loop exit
PB: predicated region body
PF: predicated region fallthrough
CT: control target
= control target key end

     0   :  { %2 = vsyncpa [#allocation1], 0  ;;  %s279_s8 = smov [#allocation0]   ;;  %s343_s0 = inlined_call_operand.hbm [shape: f32[1,3,16,48], index: 0, kind: input, shape index: {}]   ;;  %s344_s1 = inlined_call_operand.vmem [shape: f32[3,768], index: 1, kind: output, shape index: {}]  }
   0x1   :  { %s6_s0 = sshll.u32 %s343_s0, 4  ;;  %s8_s9 = sshll.u32 %s279_s8, 4  ;;  %s7_s0 = int_to_ptr.hbm [resolvable:$true] %s6_s0  ;;  %s9_s9 = int_to_ptr.vmem [resolvable:$true] %s8_s9 }
   0x2   :  { %11 = dma.hbm_to_vmem [thread:$0]  %s7_s0, 768, %s9_s9, [#allocation1]  }
   0x3   :  { %277 = dma.done.wait [#allocation1], 768  }
   0x4   :  { %278 = vsyncadd [#allocation1], 4294966528  ;;  %s26_s10 = smov 3  ;;  %s29_s11 = smov 12  ;;  %vm31_vm0 = vcmask 1043458   ;;  %vm17_vm1 = vcmask 1045508  }
   0x5   :  { %s34_s12 = smov 48  ;;  %s39_s13 = smov 3  ;;  %vm51_vm2 = vcmask 130048   ;;  %v27_v0 = vld [vmem:[#allocation0 + $0xd] ss:$16 sm:%s26_s10]   ;;  %vm55_vm3 = vcmask 261120  }
   0x6   :  { %s42_s14 = smov 12  ;;  %s47_s15 = smov 48  ;;  %v30_v1 = vld [vmem:[#allocation0 + $0x7d] ss:$-40 sm:%s29_s11]   ;;  %vm19_vm4 = vcmask 392192   ;;  %vm60_vm5 = vcmask 1048448  }
   0x7   :  { %s105_s16 = smov 3  ;;  %s108_s17 = smov 12  ;;  %v35_v2 = vld [vmem:[#allocation0 - $0x2b] ss:$16 sm:%s34_s12]   ;;  %v32_v3 = vsel %vm31_vm0, %v30_v1, %v27_v0  ;;  %v40_v4 = vld [vmem:[#allocation0 + $0xd] ss:$16 sm:%s39_s13]  }
   0x8   :  { %s113_s18 = smov 48  ;;  %s66_s19 = smov 3  ;;  %v43_v5 = vld [vmem:[#allocation0 + $0x7d] ss:$-40 sm:%s42_s14]   ;;  %v37_v7 = vsel %vm17_vm1, %v35_v2, %v32_v3  ;;  %v106_v9 = vld [vmem:[#allocation0 + $0xf] ss:$16 sm:%s105_s16]  }
   0x9   :  { %s69_s20 = smov 12  ;;  %s74_s21 = smov 48  ;;  %v48_v6 = vld [vmem:[#allocation0 - $0x2b] ss:$16 sm:%s47_s15]   ;;  %v45_v8 = vsel %vm31_vm0, %v43_v5, %v40_v4  ;;  %v109_v10 = vld [vmem:[#allocation0 + $0x7f] ss:$-40 sm:%s108_s17]  }
   0xa   :  { %v114_v11 = vld [vmem:[#allocation0 - $0x29] ss:$16 sm:%s113_s18]   ;;  %v50_v12 = vsel %vm17_vm1, %v48_v6, %v45_v8  ;;  %v111_v13 = vsel %vm31_vm0, %v109_v10, %v106_v9  ;;  %v67_v14 = vld [vmem:[#allocation0 + $0xa] ss:$16 sm:%s66_s19]   ;;  %v75_v19 = vld [vmem:[#allocation0 - $0x2e] ss:$16 sm:%s74_s21]  }
   0xb   :  { %v70_v15 = vld [vmem:[#allocation0 + $0x7a] ss:$-40 sm:%s69_s20]   ;;  %v52_v16 = vsel %vm51_vm2, %v50_v12, %v37_v7  ;;  %v116_v17 = vsel %vm17_vm1, %v114_v11, %v111_v13  ;;  %s79_s22 = smov 3  ;;  %s82_s23 = smov 12  ;;  %vm119_vm6 = vcmask 1048192   ;;  %vm178_vm7 = vcmask 654592  }
   0xc   :  { %v72_v18 = vsel %vm31_vm0, %v70_v15, %v67_v14  ;;  %s280_s24 = smov 112   ;;  %s281_s25 = smov 80   ;;  %v80_v20 = vld [vmem:[#allocation0 + $0x2] ss:$16 sm:%s79_s22]   ;;  %vm100_vm8 = vcmask 1048320   ;;  %vm139_vm9 = vcmask 916992  }
   0xd   :  { %53 = vrot.lane.b32.xlu0 %v52_v16, %s280_s24  ;;  %117 = vrot.lane.b32.xlu1 %v116_v17, %s281_s25  ;;  %v83_v21 = vld [vmem:[#allocation0 + $0x52] ss:$-24 sm:%s82_s23]   ;;  %s87_s26 = smov 48  ;;  %s125_s27 = smov 3  ;;  %v77_v24 = vsel %vm17_vm1, %v75_v19, %v72_v18  ;;  %vm159_vm10 = vcmask 785792   ;;  %vm198_vm11 = vcmask 523392  }
   0xe   :  { %v85_v22 = vsel %vm31_vm0, %v83_v21, %v80_v20  ;;  %v88_v23 = vld [vmem:[#allocation0 - $0x26] ss:$16 sm:%s87_s26]   ;;  %s128_s28 = smov 12  ;;  %v126_v26 = vld [vmem:[#allocation0 + $0xc] ss:$16 sm:%s125_s27]   ;;  %s133_s29 = smov 48 }
   0xf   :  { %v90_v25 = vsel %vm17_vm1, %v88_v23, %v85_v22  ;;  %v129_v27 = vld [vmem:[#allocation0 + $0x7c] ss:$-40 sm:%s128_s28]   ;;  %s184_s30 = smov 3  ;;  %s187_s2 = smov 12 }
  0x10   :  { %v131_v28 = vsel %vm31_vm0, %v129_v27, %v126_v26  ;;  %v134_v29 = vld [vmem:[#allocation0 - $0x2c] ss:$16 sm:%s133_s29]   ;;  %s192_s3 = smov 48  ;;  %v92_v30 = vsel %vm55_vm3, %v90_v25, %v77_v24  ;;  %v185_v32 = vld [vmem:[#allocation0 + $0xb] ss:$16 sm:%s184_s30]   ;;  %s145_s4 = smov 3 }
  0x11   :  { %v136_v31 = vsel %vm17_vm1, %v134_v29, %v131_v28  ;;  %s148_s5 = smov 12  ;;  %v146_v33 = vld [vmem:[#allocation0 + $0x1] ss:$16 sm:%s145_s4]   ;;  %s153_s6 = smov 48  ;;  %v188_v35 = vld [vmem:[#allocation0 + $0x7b] ss:$-40 sm:%s187_s2]  }
  0x12   :  { %v149_v34 = vld [vmem:[#allocation0 + $0x51] ss:$-24 sm:%s148_s5]   ;;  %s164_s7 = smov 3  ;;  %s167_s0 = smov 12  ;;  %v190_v41 = vsel %vm31_vm0, %v188_v35, %v185_v32  ;;  %v193_v42 = vld [vmem:[#allocation0 - $0x2d] ss:$16 sm:%s192_s3]  }
  0x13   :  { %v151_v36 = vsel %vm31_vm0, %v149_v34, %v146_v33  ;;  %v154_v37 = vld [vmem:[#allocation0 - $0x27] ss:$16 sm:%s153_s6]   ;;  %s282_s8 = smov 96   ;;  %s283_s9 = smov 64   ;;  %v165_v39 = vld [vmem:[#allocation0 + $0xe] ss:$16 sm:%s164_s7]   ;;  %v195_v45 = vsel %vm17_vm1, %v193_v42, %v190_v41 }
  0x14   :  { %v156_v38 = vsel %vm17_vm1, %v154_v37, %v151_v36  ;;  %v168_v40 = vld [vmem:[#allocation0 + $0x7e] ss:$-40 sm:%s167_s0]   ;;  %s172_s10 = smov 48  ;;  %s284_s11 = smov 48  }
  0x15   :  { %93 = vrot.lane.b32.xlu0 %v92_v30, %s282_s8  ;;  %137 = vrot.lane.b32.xlu1 %v136_v31, %s283_s9  ;;  %v170_v43 = vsel %vm31_vm0, %v168_v40, %v165_v39  ;;  %v173_v44 = vld [vmem:[#allocation0 - $0x2a] ss:$16 sm:%s172_s10]   ;;  %s285_s12 = smov 16   ;;  %s286_s13 = smov 32  }
  0x16   :  { %157 = vrot.lane.b32.xlu2 %v156_v38, %s284_s11  ;;  %v175_v46 = vsel %vm17_vm1, %v173_v44, %v170_v43  ;;  %s15_s14 = smov 48  ;;  %v14_v47 = vld [vmem:[#allocation0] ss:$8 sm:$0xf]  }
  0x17   :  { %v16_v48 = vld [vmem:[#allocation0] ss:$8 sm:%s15_s14]  }
  0x18   :  { %v18_v49 = vsel %vm17_vm1, %v16_v48, %v14_v47 }
  0x19   :  { %20 = vst.msk [vmem:[#allocation2] ss:$24 sm:$0x3] %vm19_vm4, %v18_v49  }
  0x1a   :  { %22 = vst.msk [vmem:[#allocation2 - $0x2f] ss:$24 sm:$0xc] %vm19_vm4, %v18_v49  }
  0x1b   :  { %24 = vst.msk [vmem:[#allocation2 - $0x5e] ss:$24 sm:$0x30] %vm19_vm4, %v18_v49  }
  0x1d   :  { %196 = vrot.lane.b32.xlu0 %v195_v45, %s285_s12 }
  0x1e   :  { %176 = vrot.lane.b32.xlu2 %v175_v46, %s286_s13 }
  0x70   :  { %v158_v50 = vpop.permute.xlu2 %157  }
  0x78   :  { %v177_v51 = vpop.permute.xlu2 %176  }
  0x7f   :  { %v54_v52 = vpop.permute.xlu0 %53   ;;  %v118_v53 = vpop.permute.xlu1 %117  }
  0x80   :  { %57 = vst.msk [vmem:[#allocation2 + $0x28] sm:$0x7] %vm55_vm3, %v54_v52  }
  0x81   :  { %59 = vst.msk [vmem:[#allocation2 + $0xd] sm:$0x38] %vm55_vm3, %v54_v52  }
  0x82   :  { %62 = vst.msk [vmem:[#allocation2 + $0x20] sm:$0x7] %vm60_vm5, %v54_v52  }
  0x83   :  { %64 = vst.msk [vmem:[#allocation2 + $0x5] sm:$0x38] %vm60_vm5, %v54_v52  }
  0x84   :  { %121 = vst.msk [vmem:[#allocation2 + $0x28] sm:$0x7] %vm119_vm6, %v118_v53  }
  0x85   :  { %123 = vst.msk [vmem:[#allocation2 + $0xd] sm:$0x38] %vm119_vm6, %v118_v53  }
  0x86   :  { %180 = vst.msk [vmem:[#allocation2 + $0x28] sm:$0x7] %vm178_vm7, %v177_v51  }
  0x87   :  { %v94_v54 = vpop.permute.xlu0 %93   ;;  %v138_v55 = vpop.permute.xlu1 %137   ;;  %182 = vst.msk [vmem:[#allocation2 + $0xd] sm:$0x38] %vm178_vm7, %v177_v51  }
  0x88   :  { %97 = vst.msk [vmem:[#allocation2 + $0x20] sm:$0x7] %vm51_vm2, %v94_v54  }
  0x89   :  { %99 = vst.msk [vmem:[#allocation2 + $0x5] sm:$0x38] %vm51_vm2, %v94_v54  }
  0x8a   :  { %101 = vst.msk [vmem:[#allocation2] sm:$0x7] %vm100_vm8, %v94_v54  }
  0x8b   :  { %103 = vst.msk [vmem:[#allocation2 + $0x15] sm:$0x38] %vm100_vm8, %v94_v54  }
  0x8c   :  { %141 = vst.msk [vmem:[#allocation2 + $0x20] sm:$0x7] %vm139_vm9, %v138_v55  }
  0x8d   :  { %143 = vst.msk [vmem:[#allocation2 + $0x5] sm:$0x38] %vm139_vm9, %v138_v55   ;;  %v234_v57 = vld [vmem:[#allocation2 + $0x28] sm:$0xf] }
  0x8e   :  { %160 = vst.msk [vmem:[#allocation2] sm:$0x7] %vm159_vm10, %v158_v50   ;;  %v216_v56 = vld [vmem:[#allocation2 + $0x10] sm:$0xf] }
  0x8f   :  { %162 = vst.msk [vmem:[#allocation2 + $0x15] sm:$0x38] %vm159_vm10, %v158_v50   ;;  %v197_v58 = vpop.permute.xlu0 %196  }
  0x90   :  { %241 = vst [vmem:[%s344_s1 + $0x8] sm:$0xf] %v216_v56 }
  0x91   :  { %244 = vst [vmem:[%s344_s1 + $0x14] sm:$0xf] %v234_v57 }
  0x92   :  { %200 = vst.msk [vmem:[#allocation2 + $0x20] sm:$0x7] %vm198_vm11, %v197_v58  }
  0x93   :  { %202 = vst.msk [vmem:[#allocation2 + $0x5] sm:$0x38] %vm198_vm11, %v197_v58  }
  0x95   :  { %v205_v59 = vld [vmem:[#allocation2] sm:$0xf] }
  0x96   :  { %v222_v60 = vld [vmem:[#allocation2 + $0x18] sm:$0xf]  ;;  %208 = vst [vmem:[%s344_s1] sm:$0xf] %v205_v59 }
  0x97   :  { %242 = vst [vmem:[%s344_s1 + $0xc] sm:$0xf] %v222_v60 }
  0x99   :  { %v228_v61 = vld [vmem:[#allocation2 + $0x20] sm:$0xf] }
  0x9a   :  { %v210_v62 = vld [vmem:[#allocation2 + $0x8] sm:$0xf]  ;;  %243 = vst [vmem:[%s344_s1 + $0x10] sm:$0xf] %v228_v61 }
  0x9b   :  { %240 = vst [vmem:[%s344_s1 + $0x4] sm:$0xf] %v210_v62 }
  0x9c   :  { %239 = vsyncpa [#allocation1], 1 }

// kernel: model_forward.1
= control target key start
LH: loop header
LB: loop body
LE: loop exit
PB: predicated region body
PF: predicated region fallthrough
CT: control target
= control target key end

     0   :  { %vm164_vm0 = vcmask 1042432   ;;  %vm257_vm1 = vcmask 1041409   ;;  %vm264_vm2 = vcmask 17408   ;;  %vm319_vm3 = vcmask 1042434   ;;  %s494_s0 = inlined_call_operand.vmem [shape: f32[3,768], index: 0, kind: input, shape index: {}]   ;;  %s495_s1 = inlined_call_operand.vmem [shape: f32[3,2,3,768], index: 1, kind: input, shape index: {}]   ;;  %s496_s2 = inlined_call_operand.vmem [shape: f32[3,2], index: 2, kind: input, shape index: {}]   ;;  %s497_s3 = inlined_call_operand.vmem [shape: f32[3,2], index: 3, kind: output, shape index: {}]  }
   0x1   :  { %v359_v0 = vld [vmem:[%s494_s0] sm:$0x77]  ;;  %v364_v1 = vld [vmem:[%s494_s0 + $0x8] sm:$0x77]  ;;  %v369_v2 = vld [vmem:[%s494_s0 + $0x10] sm:$0x77] }
   0x2   :  { %v17_v3 = vld [vmem:[%s495_s1] sm:$0x77]  ;;  %v18_v4 = vld [vmem:[%s495_s1 + $0x8] sm:$0x77]  ;;  %v19_v5 = vld [vmem:[%s495_s1 + $0x10] sm:$0x77] }
   0x3   :  { %v35_v6 = vmul.f32 %v17_v3, %v359_v0  ;;  %v36_v7 = vmul.f32 %v18_v4, %v364_v1  ;;  %v37_v8 = vmul.f32 %v19_v5, %v369_v2  ;;  %v20_v9 = vld [vmem:[%s495_s1 + $0x18] sm:$0x77]  ;;  %v22_v11 = vld [vmem:[%s495_s1 + $0x28] sm:$0x77]  ;;  %v23_v12 = vld [vmem:[%s495_s1 + $0x30] sm:$0x77] }
   0x4   :  { %v38_v10 = vmul.f32 %v20_v9, %v359_v0  ;;  %v21_v13 = vld [vmem:[%s495_s1 + $0x20] sm:$0x77]  ;;  %v40_v14 = vmul.f32 %v22_v11, %v369_v2  ;;  %v24_v15 = vld [vmem:[%s495_s1 + $0x38] sm:$0x77]  ;;  %v41_v16 = vmul.f32 %v23_v12, %v359_v0  ;;  %v26_v29 = vld [vmem:[%s495_s1 + $0x48] sm:$0x77] }
   0x5   :  { %71 = vst [vmem:[#allocation1] ss:$2 sm:$0xff] %v35_v6  ;;  %v39_v19 = vmul.f32 %v21_v13, %v364_v1  ;;  %v42_v27 = vmul.f32 %v24_v15, %v364_v1  ;;  %v25_v32 = vld [vmem:[%s495_s1 + $0x40] sm:$0x77]  ;;  %v44_v36 = vmul.f32 %v26_v29, %v359_v0  ;;  %v27_v40 = vld [vmem:[%s495_s1 + $0x50] sm:$0x77]  ;;  %v249_v13 = vlaneseq }
   0x6   :  { %73 = vst [vmem:[#allocation1 + $0x10] ss:$2 sm:$0xff] %v36_v7  ;;  %v28_v41 = vld [vmem:[%s495_s1 + $0x58] sm:$0x77]  ;;  %v43_v42 = vmul.f32 %v25_v32, %v369_v2  ;;  %v29_v48 = vld [vmem:[%s495_s1 + $0x60] sm:$0x77]  ;;  %v45_v50 = vmul.f32 %v27_v40, %v364_v1 }
   0x7   :  { %75 = vst [vmem:[#allocation1 + $0x20] ss:$2 sm:$0xff] %v37_v8  ;;  %v30_v49 = vld [vmem:[%s495_s1 + $0x68] sm:$0x77]  ;;  %v46_v54 = vmul.f32 %v28_v41, %v369_v2  ;;  %v47_v61 = vmul.f32 %v29_v48, %v359_v0  ;;  %v31_v4 = vld [vmem:[%s495_s1 + $0x70] sm:$0x77] }
   0x8   :  { %83 = vst [vmem:[#allocation1 + $0x30] ss:$2 sm:$0xff] %v38_v10  ;;  %v48_v62 = vmul.f32 %v30_v49, %v364_v1  ;;  %v32_v9 = vld [vmem:[%s495_s1 + $0x78] sm:$0x77]  ;;  %vm322_vm4 = vcmask 10240  }
   0x9   :  { %v50_v29 = vmul.f32 %v32_v9, %v359_v0 }
   0xc   :  { %v76_v17 = vld.sshfl [vmem:[#allocation1] sm:$0xff pattern:$0x75316420]  ;;  %v77_v18 = vld.sshfl [vmem:[#allocation1 + $0x8] sm:$0xff pattern:$0x75316420] }
   0xd   :  { %v78_v20 = vld.sshfl [vmem:[#allocation1 + $0x10] sm:$0xff pattern:$0x75316420]  ;;  %v79_v21 = vld.sshfl [vmem:[#allocation1 + $0x18] sm:$0xff pattern:$0x75316420] }
   0xe   :  { %v80_v22 = vld.sshfl [vmem:[#allocation1 + $0x20] sm:$0xff pattern:$0x75316420]  ;;  %v81_v23 = vld.sshfl [vmem:[#allocation1 + $0x28] sm:$0xff pattern:$0x75316420] }
   0xf   :  { %87 = vst [vmem:[#allocation1 + $0x10] ss:$2 sm:$0xff] %v40_v14  ;;  %v165_v24 = vsel %vm164_vm0, %v76_v17, 0.0  ;;  %v166_v25 = vsel %vm164_vm0, %v77_v18, 0.0  ;;  %v168_v26 = vsel %vm164_vm0, %v78_v20, 0.0  ;;  %v170_v30 = vsel %vm164_vm0, %v79_v21, 0.0 }
  0x10   :  { %92 = vst [vmem:[#allocation1 + $0x20] ss:$2 sm:$0xff] %v41_v16  ;;  %v167_v28 = vadd.f32 %v166_v25, %v165_v24  ;;  %v84_v31 = vld.sshfl [vmem:[#allocation1 + $0x30] sm:$0xff pattern:$0x75316420]  ;;  %v172_v35 = vsel %vm164_vm0, %v80_v22, 0.0  ;;  %v49_v24 = vmul.f32 %v31_v4, %v369_v2 }
  0x11   :  { %86 = vst [vmem:[#allocation1] ss:$2 sm:$0xff] %v39_v19  ;;  %v85_v34 = vld.sshfl [vmem:[#allocation1 + $0x38] sm:$0xff pattern:$0x75316420]  ;;  %v178_v37 = vsel %vm164_vm0, %v84_v31, 0.0 }
  0x12   :  { %v169_v33 = vadd.f32 %v168_v26, %v167_v28  ;;  %93 = vst [vmem:[#allocation1 + $0x30] ss:$2 sm:$0xff] %v42_v27  ;;  %v179_v38 = vsel %vm164_vm0, %v85_v34, 0.0  ;;  %v174_v43 = vsel %vm164_vm0, %v81_v23, 0.0  ;;  %v278_v20 = vshrl.u32 %v249_v13, 7 }
  0x13   :  { %v180_v47 = vadd.f32 %v179_v38, %v178_v37  ;;  %v33_v27 = vld [vmem:[%s495_s1 + $0x80] sm:$0x77]  ;;  %v34_v28 = vld [vmem:[%s495_s1 + $0x88] sm:$0x77] }
  0x14   :  { %v171_v39 = vadd.f32 %v170_v30, %v169_v33  ;;  %330 = vset.pattern.permute.xlu1 %v278_v20  ;;  %331 = vset.pattern.permute.xlu2 %v278_v20  ;;  %v52_v37 = vmul.f32 %v34_v28, %v369_v2  ;;  %v51_v0 = vmul.f32 %v33_v27, %v364_v1 }
  0x15   :  { %329 = vset.pattern.permute.xlu0 %v278_v20 }
  0x16   :  { %v173_v44 = vadd.f32 %v172_v35, %v171_v39  ;;  %v90_v45 = vld.sshfl [vmem:[#allocation1 + $0x10] sm:$0xff pattern:$0x75316420]  ;;  %v91_v46 = vld.sshfl [vmem:[#allocation1 + $0x18] sm:$0xff pattern:$0x75316420] }
  0x17   :  { %101 = vst [vmem:[#allocation1 + $0x10] ss:$2 sm:$0xff] %v44_v36  ;;  %v185_v57 = vsel %vm164_vm0, %v90_v45, 0.0  ;;  %v94_v59 = vld.sshfl [vmem:[#allocation1 + $0x20] sm:$0xff pattern:$0x75316420] }
  0x18   :  { %v175_v51 = vadd.f32 %v174_v43, %v173_v44  ;;  %v88_v52 = vld.sshfl [vmem:[#allocation1] sm:$0xff pattern:$0x75316420]  ;;  %v89_v53 = vld.sshfl [vmem:[#allocation1 + $0x8] sm:$0xff pattern:$0x75316420] }
  0x19   :  { %v181_v55 = vsel %vm164_vm0, %v88_v52, 0.0  ;;  %v183_v56 = vsel %vm164_vm0, %v89_v53, 0.0  ;;  %98 = vst [vmem:[#allocation1] ss:$2 sm:$0xff] %v43_v42  ;;  %v191_v6 = vsel %vm164_vm0, %v94_v59, 0.0  ;;  %v187_v10 = vsel %vm164_vm0, %v91_v46, 0.0 }
  0x1a   :  { %176 = vadd.xlane.f32.xlu0 %v175_v51  ;;  %v182_v58 = vadd.f32 %v181_v55, %v180_v47  ;;  %v95_v60 = vld.sshfl [vmem:[#allocation1 + $0x28] sm:$0xff pattern:$0x75316420]  ;;  %v96_v63 = vld.sshfl [vmem:[#allocation1 + $0x30] sm:$0xff pattern:$0x75316420] }
  0x1b   :  { %v97_v3 = vld.sshfl [vmem:[#allocation1 + $0x38] sm:$0xff pattern:$0x75316420]  ;;  %102 = vst [vmem:[#allocation1 + $0x20] ss:$2 sm:$0xff] %v45_v50  ;;  %v192_v7 = vsel %vm164_vm0, %v95_v60, 0.0 }
  0x1c   :  { %v184_v5 = vadd.f32 %v183_v56, %v182_v58  ;;  %v194_v8 = vsel %vm164_vm0, %v96_v63, 0.0  ;;  %103 = vst [vmem:[#allocation1 + $0x30] ss:$2 sm:$0xff] %v46_v54  ;;  %v193_v11 = vadd.f32 %v192_v7, %v191_v6  ;;  %v196_v12 = vsel %vm164_vm0, %v97_v3, 0.0 }
  0x1e   :  { %v186_v14 = vadd.f32 %v185_v57, %v184_v5  ;;  %v104_v15 = vld.sshfl [vmem:[#allocation1 + $0x10] sm:$0xff pattern:$0x75316420]  ;;  %v105_v16 = vld.sshfl [vmem:[#allocation1 + $0x18] sm:$0xff pattern:$0x75316420]  ;;  %v195_v17 = vadd.f32 %v194_v8, %v193_v11 }
  0x1f   :  { %111 = vst [vmem:[#allocation1 + $0x10] ss:$2 sm:$0xff] %v48_v62  ;;  %v204_v18 = vsel %vm164_vm0, %v104_v15, 0.0  ;;  %v205_v19 = vsel %vm164_vm0, %v105_v16, 0.0 }
  0x20   :  { %v188_v21 = vadd.f32 %v187_v10, %v186_v14  ;;  %v99_v22 = vld.sshfl [vmem:[#allocation1] sm:$0xff pattern:$0x75316420]  ;;  %v100_v23 = vld.sshfl [vmem:[#allocation1 + $0x8] sm:$0xff pattern:$0x75316420]  ;;  %v197_v25 = vadd.f32 %v196_v12, %v195_v17  ;;  %v206_v31 = vadd.f32 %v205_v19, %v204_v18 }
  0x21   :  { %v198_v26 = vsel %vm164_vm0, %v99_v22, 0.0  ;;  %110 = vst [vmem:[#allocation1] ss:$2 sm:$0xff] %v47_v61  ;;  %v200_v30 = vsel %vm164_vm0, %v100_v23, 0.0  ;;  %v274_v19 = vld [vmem:[%s496_s2] sm:$0x7] }
  0x22   :  { %189 = vadd.xlane.f32.xlu0 %v188_v21  ;;  %v199_v32 = vadd.f32 %v198_v26, %v197_v25  ;;  %v106_v33 = vld.sshfl [vmem:[#allocation1 + $0x20] sm:$0xff pattern:$0x75316420]  ;;  %v107_v34 = vld.sshfl [vmem:[#allocation1 + $0x28] sm:$0xff pattern:$0x75316420] }
  0x23   :  { %v108_v35 = vld.sshfl [vmem:[#allocation1 + $0x30] sm:$0xff pattern:$0x75316420]  ;;  %v109_v36 = vld.sshfl [vmem:[#allocation1 + $0x38] sm:$0xff pattern:$0x75316420] }
  0x24   :  { %v201_v38 = vadd.f32 %v200_v30, %v199_v32  ;;  %112 = vst [vmem:[#allocation1 + $0x20] ss:$2 sm:$0xff] %v49_v24  ;;  %v207_v39 = vsel %vm164_vm0, %v106_v33, 0.0  ;;  %v209_v40 = vsel %vm164_vm0, %v107_v34, 0.0  ;;  %v211_v43 = vsel %vm164_vm0, %v108_v35, 0.0 }
  0x25   :  { %119 = vst [vmem:[#allocation1 + $0x30] ss:$2 sm:$0xff] %v50_v29  ;;  %v208_v41 = vadd.f32 %v207_v39, %v206_v31  ;;  %v213_v2 = vsel %vm164_vm0, %v109_v36, 0.0  ;;  %v283_v20 = vperm.slane %v274_v19, 1  ;;  %v290_v21 = vperm.slane %v274_v19, 2 }
  0x26   :  { %v115_v42 = vld.sshfl [vmem:[#allocation1 + $0x10] sm:$0xff pattern:$0x75316420]  ;;  %202 = vadd.xlane.f32.xlu1 %v201_v38  ;;  %v116_v44 = vld.sshfl [vmem:[#allocation1 + $0x18] sm:$0xff pattern:$0x75316420] }
  0x27   :  { %v210_v45 = vadd.f32 %v209_v40, %v208_v41  ;;  %123 = vst [vmem:[#allocation1 + $0x10] ss:$2 sm:$0xff] %v52_v37  ;;  %v220_v50 = vsel %vm164_vm0, %v115_v42, 0.0  ;;  %v222_v52 = vsel %vm164_vm0, %v116_v44, 0.0  ;;  %v250_v23 = vand.u32 127, %v249_v13 }
  0x28   :  { %v113_v46 = vld.sshfl [vmem:[#allocation1] sm:$0xff pattern:$0x75316420]  ;;  %v114_v47 = vld.sshfl [vmem:[#allocation1 + $0x8] sm:$0xff pattern:$0x75316420] }
  0x29   :  { %v217_v48 = vsel %vm164_vm0, %v113_v46, 0.0  ;;  %v218_v49 = vsel %vm164_vm0, %v114_v47, 0.0  ;;  %v212_v1 = vadd.f32 %v211_v43, %v210_v45  ;;  %122 = vst [vmem:[#allocation1] ss:$2 sm:$0xff] %v51_v0  ;;  %v276_v35 = vperm.slane %v274_v19, 0 }
  0x2a   :  { %v219_v51 = vadd.f32 %v218_v49, %v217_v48  ;;  %v335_v0 = vmov 0  }
  0x2b   :  { %v214_v53 = vadd.f32 %v213_v2, %v212_v1  ;;  %v117_v54 = vld.sshfl [vmem:[#allocation1 + $0x20] sm:$0xff pattern:$0x75316420]  ;;  %v118_v55 = vld.sshfl [vmem:[#allocation1 + $0x28] sm:$0xff pattern:$0x75316420] }
  0x2c   :  { %v221_v56 = vadd.f32 %v220_v50, %v219_v51  ;;  %v224_v57 = vsel %vm164_vm0, %v117_v54, 0.0  ;;  %v120_v58 = vld.sshfl [vmem:[#allocation1 + $0x30] sm:$0xff pattern:$0x75316420]  ;;  %v226_v62 = vsel %vm164_vm0, %v118_v55, 0.0 }
  0x2d   :  { %v121_v60 = vld.sshfl [vmem:[#allocation1 + $0x38] sm:$0xff pattern:$0x75316420]  ;;  %v230_v61 = vsel %vm164_vm0, %v120_v58, 0.0 }
  0x2e   :  { %v223_v59 = vadd.f32 %v222_v52, %v221_v56  ;;  %215 = vadd.xlane.f32.xlu1 %v214_v53  ;;  %v231_v63 = vsel %vm164_vm0, %v121_v60, 0.0  ;;  %v126_v4 = vld.sshfl [vmem:[#allocation1 + $0x10] sm:$0xff pattern:$0x75316420] }
  0x2f   :  { %v232_v5 = vadd.f32 %v231_v63, %v230_v61  ;;  %v127_v11 = vld.sshfl [vmem:[#allocation1 + $0x18] sm:$0xff pattern:$0x75316420]  ;;  %v237_v14 = vsel %vm164_vm0, %v126_v4, 0.0 }
  0x30   :  { %v225_v3 = vadd.f32 %v224_v57, %v223_v59  ;;  %v124_v6 = vld.sshfl [vmem:[#allocation1] sm:$0xff pattern:$0x75316420]  ;;  %v125_v7 = vld.sshfl [vmem:[#allocation1 + $0x8] sm:$0xff pattern:$0x75316420] }
  0x31   :  { %v233_v9 = vsel %vm164_vm0, %v124_v6, 0.0  ;;  %v235_v10 = vsel %vm164_vm0, %v125_v7, 0.0  ;;  %v239_v16 = vsel %vm164_vm0, %v127_v11, 0.0 }
  0x32   :  { %v227_v8 = vadd.f32 %v226_v62, %v225_v3  ;;  %v234_v12 = vadd.f32 %v233_v9, %v232_v5 }
  0x34   :  { %228 = vadd.xlane.f32.xlu2 %v227_v8  ;;  %v236_v15 = vadd.f32 %v235_v10, %v234_v12 }
  0x36   :  { %v238_v17 = vadd.f32 %v237_v14, %v236_v15 }
  0x38   :  { %v240_v18 = vadd.f32 %v239_v16, %v238_v17 }
  0x3c   :  { %241 = vadd.xlane.f32.xlu2 %v240_v18 }
  0x47   :  { %288 = vperm.xlu1 %330, %v283_v20  }
  0x4f   :  { %333 = vset.pattern.permute.xlu1 %v335_v0 }
  0x54   :  { %295 = vperm.xlu2 %331, %v290_v21  }
  0x5c   :  { %332 = vset.pattern.permute.xlu2 %v335_v0 }
  0x8d   :  { %v177_v22 = vpop.xlane.xlu0 %176 }
  0x8e   :  { %v251_v24 = vperm.slane %v177_v22, %v250_v23 }
  0x95   :  { %v190_v25 = vpop.xlane.xlu0 %189 }
  0x96   :  { %v252_v26 = vperm.slane %v190_v25, %v250_v23 }
  0x98   :  { %v258_v27 = vsel %vm257_vm1, %v252_v26, %v251_v24 }
  0x99   :  { %v265_v28 = vsel %vm264_vm2, %v258_v27, 0.0  ;;  %v203_v29 = vpop.xlane.xlu1 %202 }
  0x9a   :  { %266 = vadd.xlane.f32.xlu0 %v265_v28  ;;  %v253_v31 = vperm.slane %v203_v29, %v250_v23 }
  0xa1   :  { %v216_v30 = vpop.xlane.xlu1 %215 }
  0xa2   :  { %v254_v32 = vperm.slane %v216_v30, %v250_v23 }
  0xa4   :  { %v259_v33 = vsel %vm257_vm1, %v254_v32, %v253_v31 }
  0xa5   :  { %v268_v34 = vsel %vm264_vm2, %v259_v33, 0.0 }
  0xa6   :  { %269 = vadd.xlane.f32.xlu1 %v268_v34 }
  0xa7   :  { %v229_v13 = vpop.xlane.xlu2 %228 }
  0xa8   :  { %v255_v36 = vperm.slane %v229_v13, %v250_v23 }
  0xae   :  { %281 = vperm.xlu0 %329, %v276_v35  }
  0xaf   :  { %v242_v37 = vpop.xlane.xlu2 %241 }
  0xb0   :  { %v256_v38 = vperm.slane %v242_v37, %v250_v23 }
  0xb2   :  { %v260_v39 = vsel %vm257_vm1, %v256_v38, %v255_v36 }
  0xb3   :  { %v271_v40 = vsel %vm264_vm2, %v260_v39, 0.0 }
  0xb4   :  { %272 = vadd.xlane.f32.xlu2 %v271_v40 }
  0xb6   :  { %334 = vset.pattern.permute.xlu0 %v335_v0 }
  0xb7   :  { %v296_v45 = vpop.permute.xlu2 %295 }
  0xb9   :  { %v289_v41 = vpop.permute.xlu1 %288 }
 0x10d   :  { %v267_v42 = vpop.xlane.xlu0 %266 }
 0x119   :  { %v270_v43 = vpop.xlane.xlu1 %269 }
 0x11a   :  { %v301_v44 = vadd.f32 %v289_v41, %v270_v43 }
 0x11c   :  { %310 = vperm.xlu1 %333, %v301_v44  }
 0x120   :  { %v282_v46 = vpop.permute.xlu0 %281 }
 0x121   :  { %v300_v47 = vadd.f32 %v282_v46, %v267_v42 }
 0x123   :  { %307 = vperm.xlu2 %332, %v300_v47  }
 0x127   :  { %v273_v2 = vpop.xlane.xlu2 %272 }
 0x128   :  { %v302_v48 = vadd.f32 %v296_v45, %v273_v2 }
 0x12b   :  { %313 = vperm.xlu2 %332, %v302_v48  }
 0x17d   :  { %v308_v49 = vpop.permute.xlu2 %307 }
 0x17e   :  { %v315_v51 = vperm.slane %v308_v49, %v250_v23 }
 0x185   :  { %v314_v50 = vpop.permute.xlu2 %313 }
 0x186   :  { %v317_v53 = vperm.slane %v314_v50, %v250_v23 }
 0x18e   :  { %v311_v1 = vpop.permute.xlu1 %310 }
 0x18f   :  { %v316_v52 = vperm.slane %v311_v1, %v250_v23 }
 0x191   :  { %v318_v54 = vsel %vm257_vm1, %v316_v52, %v315_v51 }
 0x192   :  { %v320_v55 = vsel %vm319_vm3, %v317_v53, %v318_v54 }
 0x193   :  { %323 = vst.msk [vmem:[%s497_s3] sm:$0x7] %vm322_vm4, %v320_v55 }

</bundles_post_ra>
